<compile_context>
chip_gen: v5e
topology: v5e:2x2
jax: 0.10.0
libtpu: 0.0.40
codegen_flags: <defaults>
</compile_context>

<pallas_src>
import jax
import jax.numpy as jnp
from jax.experimental import pallas as pl
from jax.experimental.pallas import tpu as pltpu


def _conv1x1_kernel(x_ref, w_ref, b_ref, o_ref):
    # x_ref: [M, C_in]      bf16 (VMEM)
    # w_ref: [C_in, C_out]  bf16 (VMEM)  -- lane-dense, MXU-ready, no re-layout
    # b_ref: [1, C_out]     f32  (VMEM)
    # o_ref: [M, C_out]     f32  (VMEM)
    acc = jnp.dot(x_ref[...], w_ref[...], preferred_element_type=jnp.float32)
    o_ref[...] = (acc + b_ref[...]).astype(o_ref.dtype)


def prepare_conv1x1_params(weight, bias):
    """One-time parameter prep (weights are static): reshape + transpose + bf16 cast.

    weight: [C_out, C_in, 1, 1] (torch Conv2d layout)
    bias:   [C_out]
    returns (w_mat [C_in, C_out] bf16, b_mat [1, C_out] f32)
    """
    C_out, C_in = weight.shape[0], weight.shape[1]
    w_mat = weight.reshape(C_out, C_in).T.astype(jnp.bfloat16)   # [C_in, C_out]
    b_mat = bias.reshape(1, C_out).astype(jnp.float32)
    return w_mat, b_mat


def conv2d_1x1(x_nchw, w_mat, b_mat):
    """1x1 stride-1 Conv2d forward matching torch.nn.Conv2d semantics.

    x_nchw: [N, C_in, H, W] (f32)
    w_mat:  [C_in, C_out]   (bf16, from prepare_conv1x1_params)
    b_mat:  [1, C_out]      (f32)
    returns [N, C_out, H, W] (f32)
    """
    N, C_in, H, W = x_nchw.shape
    C_out = w_mat.shape[1]
    M = N * H * W

    # [N, C_in, H, W] -> [N, H, W, C_in] -> [M, C_in]; for H=W=1 this is a pure
    # reshape. Cast activations to bf16 for the MXU (accumulation stays f32).
    x_mat = jnp.transpose(x_nchw, (0, 2, 3, 1)).reshape(M, C_in).astype(jnp.bfloat16)

    bytes_accessed = (
        2 * M * C_in          # x  (bf16)
        + 2 * C_in * C_out    # w  (bf16)
        + 4 * C_out           # b  (f32)
        + 4 * M * C_out       # out (f32)
    )

    out_mat = pl.pallas_call(
        _conv1x1_kernel,
        out_shape=jax.ShapeDtypeStruct((M, C_out), jnp.float32),
        # Single invocation, full arrays resident in VMEM: no grid, no pipeline.
        in_specs=[
            pl.BlockSpec(memory_space=pltpu.MemorySpace.VMEM),
            pl.BlockSpec(memory_space=pltpu.MemorySpace.VMEM),
            pl.BlockSpec(memory_space=pltpu.MemorySpace.VMEM),
        ],
        out_specs=pl.BlockSpec(memory_space=pltpu.MemorySpace.VMEM),
        cost_estimate=pl.CostEstimate(
            flops=2 * M * C_in * C_out,
            bytes_accessed=bytes_accessed,
            transcendentals=0,
        ),
    )(x_mat, w_mat, b_mat)

    # [M, C_out] -> [N, H, W, C_out] -> [N, C_out, H, W]
    return out_mat.reshape(N, H, W, C_out).transpose(0, 3, 1, 2)


def reference_conv1x1_f32(x_nchw, weight, bias):
    # Full-precision (f32) reference of the torch module.
    N, C_in, H, W = x_nchw.shape
    C_out = weight.shape[0]
    x_mat = jnp.transpose(x_nchw, (0, 2, 3, 1)).reshape(N * H * W, C_in)
    y = x_mat @ weight.reshape(C_out, C_in).T + bias[None, :]
    return y.reshape(N, H, W, C_out).transpose(0, 3, 1, 2)


def reference_conv1x1_bf16path(x_nchw, w_mat_bf16, bias):
    # Reference that applies the same bf16 input quantization as the kernel
    # (f32 accumulation), so it should match the kernel near-exactly.
    N, C_in, H, W = x_nchw.shape
    C_out = w_mat_bf16.shape[1]
    x_mat = (jnp.transpose(x_nchw, (0, 2, 3, 1))
             .reshape(N * H * W, C_in).astype(jnp.bfloat16).astype(jnp.float32))
    y = x_mat @ w_mat_bf16.astype(jnp.float32) + bias[None, :]
    return y.reshape(N, H, W, C_out).transpose(0, 3, 1, 2)


if __name__ == "__main__":
    key = jax.random.PRNGKey(0)
    k_x, k_w, k_b = jax.random.split(key, 3)

    N, C_in, H, W = 1, 36, 1, 1
    C_out = 864

    # Deterministic synthetic parameters (shapes from the module's __init__).
    x = jax.random.normal(k_x, (N, C_in, H, W), dtype=jnp.float32)
    # Kaiming-uniform-like bound as in torch Conv2d init (fan_in = C_in * 1 * 1).
    bound = 1.0 / jnp.sqrt(jnp.float32(C_in))
    weight = jax.random.uniform(k_w, (C_out, C_in, 1, 1),
                                minval=-bound, maxval=bound, dtype=jnp.float32)
    bias = jax.random.uniform(k_b, (C_out,),
                              minval=-bound, maxval=bound, dtype=jnp.float32)

    # One-time parameter prep (static weights): [C_in, C_out] bf16 + f32 bias row.
    w_mat, b_mat = prepare_conv1x1_params(weight, bias)

    out = conv2d_1x1(x, w_mat, b_mat)
    out = jax.block_until_ready(out)
    assert out.shape == (N, C_out, H, W), out.shape

    # Kernel must match the bf16-quantized path near-exactly (f32 accumulation).
    ref_bf16 = reference_conv1x1_bf16path(x, w_mat, bias)
    assert jnp.allclose(out, ref_bf16, atol=1e-4, rtol=1e-4), "mismatch vs bf16-path reference"

    # And stay close to the full-precision torch-semantics reference
    # (bf16 input quantization only; accumulation and bias add are f32).
    ref_f32 = reference_conv1x1_f32(x, weight, bias)
    assert jnp.allclose(out, ref_f32, atol=5e-2, rtol=5e-2), "mismatch vs f32 reference"

    print("KERNEL_OK")
</pallas_src>

<mosaic_0001>
module attributes {stable_mosaic.version = 11 : i64} {
  func.func @_conv1x1_kernel(%arg0: memref<1x36xbf16, #tpu.memory_space<vmem>>, %arg1: memref<36x864xbf16, #tpu.memory_space<vmem>>, %arg2: memref<1x864xf32, #tpu.memory_space<vmem>>, %arg3: memref<1x864xf32, #tpu.memory_space<vmem>>) attributes {dimension_semantics = [], scalar_prefetch = 0 : i64, scratch_operands = 0 : i64, tpu.core_type = #tpu.core_type<tc>} {
    %c0 = arith.constant 0 : index
    %c0_0 = arith.constant 0 : index
    %0 = vector.load %arg0[%c0, %c0_0] : memref<1x36xbf16, #tpu.memory_space<vmem>>, vector<1x36xbf16>
    %c0_1 = arith.constant 0 : index
    %c0_2 = arith.constant 0 : index
    %1 = vector.load %arg1[%c0_1, %c0_2] : memref<36x864xbf16, #tpu.memory_space<vmem>>, vector<36x864xbf16>
    %cst = arith.constant dense<0.000000e+00> : vector<1x864xf32>
    %2 = tpu.matmul %0, %1, %cst {dimension_numbers = #tpu.dot_dimension_numbers<[1], [0], [0], [1], [0, 0, 1, 1], [], []>} : vector<1x36xbf16>, vector<36x864xbf16>, vector<1x864xf32> -> vector<1x864xf32>
    %c0_3 = arith.constant 0 : index
    %c0_4 = arith.constant 0 : index
    %3 = vector.load %arg2[%c0_3, %c0_4] : memref<1x864xf32, #tpu.memory_space<vmem>>, vector<1x864xf32>
    %4 = arith.addf %2, %3 : vector<1x864xf32>
    %c0_5 = arith.constant 0 : index
    %c0_6 = arith.constant 0 : index
    %5 = vector.load %arg3[%c0_5, %c0_6] : memref<1x864xf32, #tpu.memory_space<vmem>>, vector<1x864xf32>
    tpu.vector_store %arg3[%c0_5, %c0_6], %4 {strides = array<i32>} : memref<1x864xf32, #tpu.memory_space<vmem>>, vector<1x864xf32>,
    return
  }
}

</mosaic_0001>

<bundles_post_ra>
// kernel: tpu_custom_call.1
= control target key start
LH: loop header
LB: loop body
LE: loop exit
PB: predicated region body
PF: predicated region fallthrough
CT: control target
= control target key end

     0   :  { %8 = vsyncpa [#allocation3], 0  ;;  %s589_s0 = inlined_call_operand.hbm [shape: bf16[1,36], index: 0, kind: input, shape index: {}]   ;;  %s590_s1 = inlined_call_operand.hbm [shape: bf16[36,864], index: 1, kind: input, shape index: {}]   ;;  %s591_s2 = inlined_call_operand.hbm [shape: f32[1,864], index: 2, kind: input, shape index: {}]   ;;  %s592_s3 = inlined_call_operand.hbm [shape: f32[1,864], index: 3, kind: output, shape index: {}]  }
   0x1   :  { %9 = vsyncpa [#allocation6], 0  ;;  %s26_s14 = sshll.u32 %s590_s1, 4  ;;  %s27_s14 = int_to_ptr.hbm [resolvable:$true] %s26_s14 }
   0x2   :  { %10 = vsyncpa [#allocation4], 0  ;;  %s536_s15 = smov [#allocation5]   ;;  %s16_s19 = sshll.u32 %s589_s0, 4  ;;  %s17_s19 = int_to_ptr.hbm [resolvable:$true] %s16_s19 }
   0x3   :  { %s28_s16 = sshll.u32 %s536_s15, 4  ;;  %s537_s20 = smov 448   ;;  %s29_s16 = int_to_ptr.vmem [resolvable:$true] %s28_s16 }
   0x4   :  { %s538_s21 = smov 28   ;;  %s539_s22 = smov [#allocation2]  }
   0x5   :  { %34 = dma.hbm_to_vmem [thread:$0]  %s27_s14, 2240, %s29_s16, [#allocation6], %s537_s20, %s537_s20, %s538_s21  }
   0x6   :  { %s18_s23 = sshll.u32 %s539_s22, 4  ;;  %s40_s26 = sshll.u32 %s591_s2, 4  ;;  %s19_s23 = int_to_ptr.vmem [resolvable:$true] %s18_s23  ;;  %s41_s26 = int_to_ptr.hbm [resolvable:$true] %s40_s26 }
   0x7   :  { %21 = dma.hbm_to_vmem [thread:$0]  %s17_s19, 16, %s19_s23, [#allocation3]  }
   0x8   :  { %s540_s1 = smov [#allocation7]  }
   0x9   :  { %s42_s27 = sshll.u32 %s540_s1, 4  ;;  %s43_s27 = int_to_ptr.vmem [resolvable:$true] %s42_s27 }
   0xa   :  { %45 = dma.hbm_to_vmem [thread:$0]  %s41_s26, 112, %s43_s27, [#allocation6]  }
   0xb   :  { %530 = dma.done.wait [#allocation3], 16  }
   0xc   :  { %531 = vsyncadd [#allocation3], 4294967280 }
   0xd   :  { %532 = dma.done.wait [#allocation6], 2352  }
   0xe   :  { %533 = vsyncadd [#allocation6], 4294964944  ;;  %v76_v0 = vld [vmem:[#allocation5 + $0x70] sm:$0x33]  ;;  %v77_v1 = vld [vmem:[#allocation5 + $0x78] sm:$0x33] }
   0xf   :  { %v129_v2 = vunpack.c.l.b16 %v76_v0  ;;  %v130_v3 = vunpack.c.h.b16 %v76_v0  ;;  %v131_v4 = vunpack.c.l.b16 %v77_v1  ;;  %v132_v5 = vunpack.c.h.b16 %v77_v1  ;;  %v381_v6 = vld [vmem:[#allocation5 + $0x38] sm:$0xf]  ;;  %v424_v7 = vld [vmem:[#allocation5 + $0x50] sm:$0xf0]  ;;  %v421_v12 = vld [vmem:[#allocation5 + $0x3c] sm:$0xf] }
  0x10   :  { %vm190_vm0 = vcmask 1041408   ;;  %v383_v13 = vld [vmem:[#allocation5 + $0x54] sm:$0xf0]  ;;  %v389_v14 = vld [vmem:[#allocation5 + $0x40] sm:$0xf]  ;;  %v382_v23 = vor.u32 %v424_v7, %v381_v6  ;;  %vm186_vm1 = vcmask 293888  }
  0x11   :  { %v150_v8 = vpack.c.b16 %v129_v2, %v129_v2  ;;  %v151_v9 = vpack.c.b16 %v130_v3, %v130_v3  ;;  %v152_v10 = vpack.c.b16 %v131_v4, %v131_v4  ;;  %v153_v11 = vpack.c.b16 %v132_v5, %v132_v5  ;;  %v425_v15 = vld [vmem:[#allocation5 + $0x58] sm:$0xf0]  ;;  %v422_v16 = vld [vmem:[#allocation5 + $0x44] sm:$0xf]  ;;  %v391_v17 = vld [vmem:[#allocation5 + $0x5c] sm:$0xf0] }
  0x12   :  { %v353_v22 = vld [vmem:[#allocation5] sm:$0xf]  ;;  %v386_v24 = vor.u32 %v421_v12, %v383_v13  ;;  %v417_v25 = vld [vmem:[#allocation5 + $0x18] sm:$0xf0]  ;;  %v414_v26 = vld [vmem:[#allocation5 + $0x4] sm:$0xf]  ;;  %v390_v28 = vor.u32 %v425_v15, %v389_v14  ;;  %v394_v29 = vor.u32 %v422_v16, %v391_v17 }
  0x13   :  { %v192_v18 = vsel %vm190_vm0, %v150_v8, 0  ;;  %v195_v19 = vsel %vm190_vm0, %v151_v9, 0  ;;  %v198_v20 = vsel %vm190_vm0, %v152_v10, 0  ;;  %v201_v21 = vsel %vm190_vm0, %v153_v11, 0  ;;  %v355_v27 = vld [vmem:[#allocation5 + $0x1c] sm:$0xf0] }
  0x14   :  { %217 = vmatpush.bf16.msra.mxu0 %v192_v18  ;;  %230 = vmatpush.bf16.msra.mxu1 %v195_v19  ;;  %v361_v30 = vld [vmem:[#allocation5 + $0x8] sm:$0xf]  ;;  %v78_v32 = vld [vmem:[#allocation5 + $0x80] sm:$0x33]  ;;  %v415_v34 = vld [vmem:[#allocation5 + $0xc] sm:$0xf]  ;;  %v354_v39 = vor.u32 %v417_v25, %v353_v22  ;;  %v358_v40 = vor.u32 %v414_v26, %v355_v27 }
  0x15   :  { %243 = vmatpush.bf16.msra.mxu2 %v198_v20  ;;  %256 = vmatpush.bf16.msra.mxu3 %v201_v21  ;;  %v79_v31 = vld [vmem:[#allocation5 + $0x88] sm:$0x3]  ;;  %v418_v33 = vld [vmem:[#allocation5 + $0x20] sm:$0xf0]  ;;  %v133_v37 = vunpack.c.l.b16 %v78_v32  ;;  %v134_v38 = vunpack.c.h.b16 %v78_v32  ;;  %v405_v46 = vld [vmem:[#allocation5 + $0x50] sm:$0xf] }
  0x16   :  { %v363_v35 = vld [vmem:[#allocation5 + $0x24] sm:$0xf0]  ;;  %v135_v36 = vunpack.c.l.b16 %v79_v31  ;;  %v362_v43 = vor.u32 %v418_v33, %v361_v30  ;;  %v427_v47 = vld [vmem:[#allocation5 + $0x68] sm:$0xf0]  ;;  %v426_v51 = vld [vmem:[#allocation5 + $0x60] sm:$0xf0] }
  0x17   :  { %v154_v42 = vpack.c.b16 %v133_v37, %v133_v37  ;;  %v366_v44 = vor.u32 %v415_v34, %v363_v35  ;;  %v155_v45 = vpack.c.b16 %v134_v38, %v134_v38  ;;  %v397_v50 = vld [vmem:[#allocation5 + $0x48] sm:$0xf]  ;;  %v59_v52 = vld [vmem:[#allocation2] sm:$0x1]  ;;  %v423_v53 = vld [vmem:[#allocation5 + $0x4c] sm:$0xf]  ;;  %v406_v55 = vor.u32 %v427_v47, %v405_v46 }
  0x18   :  { %218 = vmatpush.bf16.msra.mxu0 %v382_v23  ;;  %231 = vmatpush.bf16.msra.mxu1 %v386_v24  ;;  %v156_v41 = vpack.c.b16 %v135_v36, %v135_v36  ;;  %v398_v56 = vor.u32 %v426_v51, %v397_v50  ;;  %v399_v57 = vld [vmem:[#allocation5 + $0x64] sm:$0xf0]  ;;  %v377_v58 = vld [vmem:[#allocation5 + $0x18] sm:$0xf]  ;;  %v420_v59 = vld [vmem:[#allocation5 + $0x30] sm:$0xf0]  ;;  %v328_v34 = vlaneseq }
  0x19   :  { %244 = vmatpush.bf16.msra.mxu2 %v390_v28  ;;  %257 = vmatpush.bf16.msra.mxu3 %v394_v29  ;;  %v204_v49 = vsel %vm190_vm0, %v154_v42, 0  ;;  %v207_v54 = vsel %vm190_vm0, %v155_v45, 0  ;;  %v369_v60 = vld [vmem:[#allocation5 + $0x10] sm:$0xf]  ;;  %v419_v61 = vld [vmem:[#allocation5 + $0x28] sm:$0xf0]  ;;  %v402_v62 = vor.u32 %v423_v53, %v399_v57  ;;  %v378_v63 = vor.u32 %v420_v59, %v377_v58 }
  0x1a   :  { %v210_v48 = vsel %vm190_vm0, %v156_v41, 0  ;;  %v370_v0 = vor.u32 %v419_v61, %v369_v60  ;;  %v416_v1 = vld [vmem:[#allocation5 + $0x14] sm:$0xf]  ;;  %v371_v2 = vld [vmem:[#allocation5 + $0x2c] sm:$0xf0]  ;;  %vm318_vm2 = vcmask 1042434  }
  0x1b   :  { %v374_v3 = vor.u32 %v416_v1, %v371_v2  ;;  %v80_v10 = vld [vmem:[#allocation7] sm:$0x7f]  ;;  %vm321_vm3 = vcmask 1044484   ;;  %vm316_vm4 = vcmask 1040384   ;;  %vm323_vm5 = vcmask 1045508   ;;  %s541_s0 = smov [#allocation8]  }
  0x1c   :  { %219 = vmatpush.bf16.msra.mxu0 %v354_v39  ;;  %232 = vmatpush.bf16.msra.mxu1 %v358_v40  ;;  %v174_v11 = vperm.slane %v80_v10, 2  ;;  %v175_v12 = vperm.slane %v80_v10, 3  ;;  %v176_v13 = vperm.slane %v80_v10, 4  ;;  %v177_v14 = vperm.slane %v80_v10, 5  ;;  %s338_s2 = sshll.u32 %s541_s0, 4  ;;  %s340_s30 = sshll.u32 %s592_s3, 4  ;;  %s339_s2 = int_to_ptr.vmem [resolvable:$true] %s338_s2  ;;  %s341_s30 = int_to_ptr.hbm [resolvable:$true] %s340_s30 }
  0x1d   :  { %245 = vmatpush.bf16.msra.mxu2 %v362_v43  ;;  %258 = vmatpush.bf16.msra.mxu3 %v366_v44  ;;  %v173_v15 = vperm.slane %v80_v10, 1  ;;  %v172_v24 = vperm.slane %v80_v10, 0  ;;  %v178_v26 = vperm.slane %v80_v10, 6  ;;  %vm325_vm6 = vcmask 1043456  }
  0x1e   :  { %vm330_vm7 = vcmp.lt.s32.totalorder %v328_v34, 864 }
  0x1f   :  { %407 = vmatmul.msk.bf16.vlgmr.msra.gmra.mxu0 %vm186_vm1, %v59_v52  ;;  %408 = vmatmul.msk.bf16.vlgmr.msra.gmra.mxu1 %vm186_vm1, %v59_v52 }
  0x20   :  { %269 = vmatpush.bf16.msrb.mxu0 %v204_v49  ;;  %409 = vmatmul.msk.bf16.vlgmr.msra.gmra.mxu2 %vm186_vm1, %v59_v52 }
  0x21   :  { %295 = vmatpush.bf16.msrb.mxu2 %v210_v48  ;;  %410 = vmatmul.msk.bf16.vlgmr.msra.gmra.mxu3 %vm186_vm1, %v59_v52 }
  0x22   :  { %282 = vmatpush.bf16.msrb.mxu1 %v207_v54 }
  0x24   :  { %270 = vmatpush.bf16.msrb.mxu0 %v398_v56 }
  0x25   :  { %296 = vmatpush.bf16.msrb.mxu2 %v406_v55 }
  0x26   :  { %283 = vmatpush.bf16.msrb.mxu1 %v402_v62 }
  0x28   :  { %271 = vmatpush.bf16.msrb.mxu0 %v370_v0 }
  0x29   :  { %297 = vmatpush.bf16.msrb.mxu2 %v378_v63 }
  0x2a   :  { %284 = vmatpush.bf16.msrb.mxu1 %v374_v3 }
  0x2f   :  { %411 = vmatmul.msk.bf16.vlgmr.msrb.gmra.mxu0 %vm186_vm1, %v59_v52  ;;  %412 = vmatmul.msk.bf16.vlgmr.msrb.gmra.mxu1 %vm186_vm1, %v59_v52 }
  0x30   :  { %413 = vmatmul.msk.bf16.vlgmr.msrb.gmra.mxu2 %vm186_vm1, %v59_v52 }
  0x9c   :  { %v221_v4 = vpop.f32.mrf.mxu0  ;;  %v234_v5 = vpop.f32.mrf.mxu1 }
  0x9d   :  { %v235_v25 = vadd.f32 %v234_v5, %v173_v15  ;;  %v222_v31 = vadd.f32 %v221_v4, %v172_v24 }
  0x9f   :  { %v310_v32 = vrot.slane %v235_v25, 7 }
  0xa1   :  { %v317_v41 = vsel %vm316_vm4, %v222_v31, %v310_v32 }
  0xa3   :  { %v247_v6 = vpop.f32.mrf.mxu2 }
  0xa4   :  { %v260_v7 = vpop.f32.mrf.mxu3  ;;  %v223_v8 = vpop.f32.mrf.mxu0  ;;  %v248_v20 = vadd.f32 %v247_v6, %v174_v11 }
  0xa5   :  { %v236_v9 = vpop.f32.mrf.mxu1  ;;  %v261_v21 = vadd.f32 %v260_v7, %v175_v12 }
  0xa6   :  { %v311_v27 = vrot.slane %v248_v20, 6 }
  0xa7   :  { %v312_v28 = vrot.slane %v261_v21, 5 }
  0xa9   :  { %v319_v38 = vsel %vm318_vm2, %v311_v27, %v312_v28 }
  0xaa   :  { %v320_v42 = vsel %vm190_vm0, %v317_v41, %v319_v38 }
  0xab   :  { %v249_v16 = vpop.f32.mrf.mxu2 }
  0xac   :  { %v262_v17 = vpop.f32.mrf.mxu3  ;;  %v273_v18 = vpop.f32.mrf.mxu0 }
  0xad   :  { %v286_v19 = vpop.f32.mrf.mxu1  ;;  %v274_v22 = vadd.f32 %v273_v18, %v176_v13 }
  0xae   :  { %v287_v23 = vadd.f32 %v286_v19, %v177_v14 }
  0xaf   :  { %v313_v29 = vrot.slane %v274_v22, 4 }
  0xb0   :  { %v314_v30 = vrot.slane %v287_v23, 3 }
  0xb2   :  { %v322_v39 = vsel %vm321_vm3, %v313_v29, %v314_v30 }
  0xb3   :  { %v299_v33 = vpop.f32.mrf.mxu2 }
  0xb4   :  { %v300_v35 = vadd.f32 %v299_v33, %v178_v26  ;;  %v275_v36 = vpop.f32.mrf.mxu0 }
  0xb5   :  { %v288_v37 = vpop.f32.mrf.mxu1 }
  0xb6   :  { %v315_v40 = vrot.slane %v300_v35, 2 }
  0xb8   :  { %v324_v43 = vsel %vm323_vm5, %v322_v39, %v315_v40 }
  0xb9   :  { %v326_v44 = vsel %vm325_vm6, %v320_v42, %v324_v43 }
  0xba   :  { %332 = vst.msk [vmem:[#allocation8] sm:$0x7f] %vm330_vm7, %v326_v44 }
  0xbb   :  { %v301_v45 = vpop.f32.mrf.mxu2  ;;  %343 = dma.vmem_to_hbm [thread:$0]  %s339_s2, 112, %s341_s30, [#allocation4]  }
  0xbc   :  { %534 = dma.done.wait [#allocation4], 112  }
  0xbd   :  { %535 = vsyncadd [#allocation4], 4294967184 }
  0xbe   :  { %348 = vsyncpa [#allocation3], 1 }
  0xbf   :  { %349 = vsyncpa [#allocation6], 1 }
  0xc0   :  { %350 = vsyncpa [#allocation4], 1 }

</bundles_post_ra>
